<compile_context>
chip_gen: v7x
topology: tpu7x:2x2x1
jax: 0.10.0
libtpu: 0.0.40
codegen_flags: <defaults>
</compile_context>

<pallas_src>
import jax
import jax.numpy as jnp
from jax.experimental import pallas as pl
from jax.experimental.pallas import tpu as pltpu


def _spatial_mlp_kernel(x_ref, a1_ref, c1_ref, a2_ref, c2_ref, enc_ref, o_ref):
    # x_ref: [TB, C, TN] slab (HW on the lane axis).  TB is small (<= 8), so a
    # static Python loop over the batch tile keeps each matmul a plain 2-D dot.
    a1 = a1_ref[...]          # [hid, C]
    a2 = a2_ref[...]          # [R, hid]
    c1 = c1_ref[...]          # [hid, 1]
    c2 = c2_ref[...]          # [R, 1]
    enc = enc_ref[...]        # [R, TN]
    for b in range(x_ref.shape[0]):
        x = x_ref[b]                                                     # [C, TN]
        # Linear1 + folded BN1, ReLU.
        h = jnp.dot(a1, x, preferred_element_type=jnp.float32)          # [hid, TN]
        h = jnp.maximum(h + c1, 0.0)
        # Linear2 + folded BN2, ReLU.
        y = jnp.dot(a2, h.astype(a2.dtype),
                    preferred_element_type=jnp.float32)                 # [R, TN]
        y = jnp.maximum(y + c2, 0.0)
        # + spatial_encoding (per spatial position, broadcast over batch).
        o_ref[b] = (y + enc).astype(o_ref.dtype)


def _choose_tiles(B, C, hid, R, hw_p, max_tn=16384, vmem_budget=10 << 20):
    """Pick (lane tile TN, batch tile TB) under a per-step VMEM budget.

    hw_p is the (padded) spatial size, a multiple of 128.
    """
    def per_step_bytes(tb, tn):
        x_db = 2 * tb * C * tn * 4          # x block, double-buffered
        out_db = 2 * tb * R * tn * 4        # out block, double-buffered
        enc_db = 2 * R * tn * 4             # enc block, double-buffered
        inter = tb * (hid + R) * tn * 4     # in-kernel h / y temporaries
        return x_db + out_db + enc_db + inter

    tn = min(hw_p, max_tn)
    tn -= tn % 128
    while tn > 128 and (hw_p % tn != 0 or per_step_bytes(1, tn) > vmem_budget):
        tn -= 128

    tb = 1
    for cand in range(min(B, 8), 0, -1):
        if B % cand == 0 and per_step_bytes(cand, tn) <= vmem_budget:
            tb = cand
            break
    return tn, tb


def spatial_aware_mlp(x, params, eps=1e-5, out_dtype=None):
    """x: [B, C, H, W] (NCHW, like the PyTorch module)."""
    B, C, H, W = x.shape
    HW = H * W
    hid = params["w1"].shape[1]
    R = params["w2"].shape[1]
    out_dtype = x.dtype if out_dtype is None else out_dtype
    wdt = x.dtype  # compute in the input dtype; f32 accumulation in the dots.

    # Fold eval-mode BatchNorm + bias into the weights (tiny tensors, once).
    s1 = params["bn1_gamma"] / jnp.sqrt(params["bn1_var"] + eps)
    t1 = params["bn1_beta"] - params["bn1_mean"] * s1
    s2 = params["bn2_gamma"] / jnp.sqrt(params["bn2_var"] + eps)
    t2 = params["bn2_beta"] - params["bn2_mean"] * s2

    a1 = (params["w1"] * s1[None, :]).T.astype(wdt)                     # [hid, C]
    c1 = (params["b1"] * s1 + t1).reshape(hid, 1).astype(jnp.float32)   # [hid, 1]
    a2 = (params["w2"] * s2[None, :]).T.astype(wdt)                     # [R, hid]
    c2 = (params["b2"] * s2 + t2).reshape(R, 1).astype(jnp.float32)     # [R, 1]

    # NOTE: no .astype() on x here — a wrapper-side cast would be an extra
    # full-tensor HBM pass on a bandwidth-bound kernel.
    x3 = x.reshape(B, C, HW)                                            # free reshape
    enc = params["spatial_encoding"].reshape(R, HW).astype(jnp.float32)

    # Pad the spatial axis to a multiple of 128 so output stores are
    # lane-dense (unmasked vst); padding is sliced off afterwards.
    HW_p = ((HW + 127) // 128) * 128
    pad = HW_p - HW
    if pad:
        x3 = jnp.pad(x3, ((0, 0), (0, 0), (0, pad)))
        enc = jnp.pad(enc, ((0, 0), (0, pad)))

    TN, TB = _choose_tiles(B, C, hid, R, HW_p)
    n_lane = HW_p // TN
    n_batch = B // TB

    # Grid ordering: lane axis outermost (batch fastest-varying) so the
    # spatial-encoding tile stays VMEM-resident across the whole batch loop.
    # If the lane axis collapses to a single tile, lead with the batch axis so
    # a 2-TensorCore chip (v7x) can shard the leading parallel axis; enc is
    # resident either way (its block index is then constant).
    if n_lane >= 2:
        grid = (n_lane, n_batch)

        def gidx(j, b):
            return j, b
    else:
        grid = (n_batch, n_lane)

        def gidx(b, j):
            return j, b

    def x_map(*g):
        j, b = gidx(*g)
        return (b, 0, j)

    def w_map(*g):
        return (0, 0)

    def enc_map(*g):
        j, b = gidx(*g)
        return (0, j)

    def out_map(*g):
        j, b = gidx(*g)
        return (b, 0, j)

    out = pl.pallas_call(
        _spatial_mlp_kernel,
        out_shape=jax.ShapeDtypeStruct((B, R, HW_p), out_dtype),
        grid_spec=pltpu.PrefetchScalarGridSpec(
            num_scalar_prefetch=0,
            grid=grid,
            in_specs=[
                pl.BlockSpec((TB, C, TN), x_map),     # x slab
                pl.BlockSpec((hid, C), w_map),        # A1 (resident)
                pl.BlockSpec((hid, 1), w_map),        # c1
                pl.BlockSpec((R, hid), w_map),        # A2
                pl.BlockSpec((R, 1), w_map),          # c2
                pl.BlockSpec((R, TN), enc_map),       # spatial encoding
            ],
            out_specs=pl.BlockSpec((TB, R, TN), out_map),
        ),
        compiler_params=pltpu.CompilerParams(
            dimension_semantics=("parallel", "parallel"),
            # Tile chooser budgets ~10 MiB; raise the scoped-VMEM limit above
            # v5e's 16 MiB default so large lane tiles are never clamped.
            vmem_limit_bytes=32 * 1024 * 1024,
        ),
    )(x3, a1, c1, a2, c2, enc)

    if pad:
        out = out[..., :HW]
    # [B, R, HW] -> [B, R, H, W] is a free reshape (no transpose needed).
    return out.reshape(B, R, H, W)


def reference_forward(x, params, eps=1e-5):
    """Pure-JAX reference mirroring the PyTorch forward (eval-mode BN)."""
    B, C, H, W = x.shape
    HW = H * W
    R = params["w2"].shape[1]
    xr = jnp.transpose(x.reshape(B, C, HW), (0, 2, 1)).reshape(-1, C)
    h = xr @ params["w1"] + params["b1"]
    h = (h - params["bn1_mean"]) / jnp.sqrt(params["bn1_var"] + eps)
    h = h * params["bn1_gamma"] + params["bn1_beta"]
    h = jnp.maximum(h, 0.0)
    y = h @ params["w2"] + params["b2"]
    y = (y - params["bn2_mean"]) / jnp.sqrt(params["bn2_var"] + eps)
    y = y * params["bn2_gamma"] + params["bn2_beta"]
    y = jnp.maximum(y, 0.0)
    y = y.reshape(B, HW, R).transpose(0, 2, 1).reshape(B, R, H, W)
    return y + params["spatial_encoding"]


def make_params(key, input_dim, reduced_dim, spatial_height, spatial_width):
    hid = input_dim // 2
    ks = jax.random.split(key, 9)
    return {
        # Linear weights stored as [in, out] (row view does x @ W)
        "w1": jax.random.normal(ks[0], (input_dim, hid), jnp.float32) * 0.1,
        "b1": jax.random.normal(ks[1], (hid,), jnp.float32) * 0.1,
        "w2": jax.random.normal(ks[2], (hid, reduced_dim), jnp.float32) * 0.1,
        "b2": jax.random.normal(ks[3], (reduced_dim,), jnp.float32) * 0.1,
        # BatchNorm1d params + running stats
        "bn1_gamma": 1.0 + 0.1 * jax.random.normal(ks[4], (hid,), jnp.float32),
        "bn1_beta": 0.1 * jax.random.normal(ks[5], (hid,), jnp.float32),
        "bn1_mean": 0.05 * jax.random.normal(ks[6], (hid,), jnp.float32),
        "bn1_var": jnp.abs(1.0 + 0.1 * jax.random.normal(ks[7], (hid,), jnp.float32)),
        "bn2_gamma": 1.0 + 0.1 * jax.random.normal(ks[8], (reduced_dim,), jnp.float32),
        "bn2_beta": jnp.linspace(-0.1, 0.1, reduced_dim, dtype=jnp.float32),
        "bn2_mean": jnp.zeros((reduced_dim,), jnp.float32),
        "bn2_var": jnp.ones((reduced_dim,), jnp.float32),
        # spatial_encoding: nn.Parameter(torch.randn(1, R, H, W))
        "spatial_encoding": jax.random.normal(
            jax.random.fold_in(key, 123),
            (1, reduced_dim, spatial_height, spatial_width), jnp.float32),
    }


if __name__ == "__main__":
    B, C, H, W = 2, 16, 16, 16      # input_dim=16, spatial = 16x16 (HW=256 lanes)
    reduced_dim = 8

    key = jax.random.PRNGKey(0)
    k_x, k_p = jax.random.split(key)
    x = jax.random.normal(k_x, (B, C, H, W), jnp.float32)
    params = make_params(k_p, C, reduced_dim, H, W)

    # f32 throughout keeps the strict 1e-5 check.  For a ~12% end-to-end
    # bandwidth saving, pass out_dtype=jnp.bfloat16 (cast happens on the final
    # store) if the consumer tolerates bf16 outputs.
    out = spatial_aware_mlp(x, params)
    out = jax.block_until_ready(out)

    ref = reference_forward(x, params)
    assert out.shape == (B, reduced_dim, H, W)
    assert jnp.allclose(out, ref, atol=1e-5, rtol=1e-5)

    print("KERNEL_OK")
</pallas_src>

<mosaic_0001>
module attributes {stable_mosaic.version = 11 : i64} {
  func.func @_spatial_mlp_kernel(%arg0: i32, %arg1: i32, %arg2: memref<2x16x256xf32, #tpu.memory_space<vmem>>, %arg3: memref<8x16xf32, #tpu.memory_space<vmem>>, %arg4: memref<8x1xf32, #tpu.memory_space<vmem>>, %arg5: memref<8x8xf32, #tpu.memory_space<vmem>>, %arg6: memref<8x1xf32, #tpu.memory_space<vmem>>, %arg7: memref<8x256xf32, #tpu.memory_space<vmem>>, %arg8: memref<2x8x256xf32, #tpu.memory_space<vmem>>) attributes {dimension_semantics = [#tpu.dimension_semantics<parallel>, #tpu.dimension_semantics<parallel>], iteration_bounds = array<i64: 1, 1>, scalar_prefetch = 0 : i64, scratch_operands = 0 : i64, tpu.core_type = #tpu.core_type<tc>, window_params = [{transform_indices = @transform_0, window_bounds = array<i64: 2, 16, 256>}, {pipeline_mode = #tpu.pipeline_mode<synchronous>, transform_indices = @transform_1, window_bounds = array<i64: 8, 16>}, {pipeline_mode = #tpu.pipeline_mode<synchronous>, transform_indices = @transform_2, window_bounds = array<i64: 8, 1>}, {pipeline_mode = #tpu.pipeline_mode<synchronous>, transform_indices = @transform_3, window_bounds = array<i64: 8, 8>}, {pipeline_mode = #tpu.pipeline_mode<synchronous>, transform_indices = @transform_4, window_bounds = array<i64: 8, 1>}, {transform_indices = @transform_5, window_bounds = array<i64: 8, 256>}, {transform_indices = @transform_6, window_bounds = array<i64: 2, 8, 256>}]} {
    %c0 = arith.constant 0 : index
    %c0_0 = arith.constant 0 : index
    %0 = vector.load %arg3[%c0, %c0_0] : memref<8x16xf32, #tpu.memory_space<vmem>>, vector<8x16xf32>
    %c0_1 = arith.constant 0 : index
    %c0_2 = arith.constant 0 : index
    %1 = vector.load %arg5[%c0_1, %c0_2] : memref<8x8xf32, #tpu.memory_space<vmem>>, vector<8x8xf32>
    %c0_3 = arith.constant 0 : index
    %c0_4 = arith.constant 0 : index
    %2 = vector.load %arg4[%c0_3, %c0_4] : memref<8x1xf32, #tpu.memory_space<vmem>>, vector<8x1xf32>
    %c0_5 = arith.constant 0 : index
    %c0_6 = arith.constant 0 : index
    %3 = vector.load %arg6[%c0_5, %c0_6] : memref<8x1xf32, #tpu.memory_space<vmem>>, vector<8x1xf32>
    %c0_7 = arith.constant 0 : index
    %c0_8 = arith.constant 0 : index
    %4 = vector.load %arg7[%c0_7, %c0_8] : memref<8x256xf32, #tpu.memory_space<vmem>>, vector<8x256xf32>
    %c0_9 = arith.constant 0 : index
    %c0_10 = arith.constant 0 : index
    %c0_11 = arith.constant 0 : index
    %5 = vector.load %arg2[%c0_9, %c0_10, %c0_11] : memref<2x16x256xf32, #tpu.memory_space<vmem>>, vector<1x16x256xf32>
    %6 = vector.shape_cast %5 : vector<1x16x256xf32> to vector<16x256xf32>
    %cst = arith.constant dense<0.000000e+00> : vector<8x256xf32>
    %7 = tpu.matmul %0, %6, %cst {dimension_numbers = #tpu.dot_dimension_numbers<[1], [0], [0], [1], [0, 0, 1, 1], [], []>} : vector<8x16xf32>, vector<16x256xf32>, vector<8x256xf32> -> vector<8x256xf32>
    %8 = vector.broadcast %2 : vector<8x1xf32> to vector<8x256xf32>
    %9 = arith.addf %7, %8 : vector<8x256xf32>
    %cst_12 = arith.constant 0.000000e+00 : f32
    %10 = vector.broadcast %cst_12 : f32 to vector<8x256xf32>
    %11 = arith.maximumf %9, %10 : vector<8x256xf32>
    %cst_13 = arith.constant dense<0.000000e+00> : vector<8x256xf32>
    %12 = tpu.matmul %1, %11, %cst_13 {dimension_numbers = #tpu.dot_dimension_numbers<[1], [0], [0], [1], [0, 0, 1, 1], [], []>} : vector<8x8xf32>, vector<8x256xf32>, vector<8x256xf32> -> vector<8x256xf32>
    %13 = vector.broadcast %3 : vector<8x1xf32> to vector<8x256xf32>
    %14 = arith.addf %12, %13 : vector<8x256xf32>
    %cst_14 = arith.constant 0.000000e+00 : f32
    %15 = vector.broadcast %cst_14 : f32 to vector<8x256xf32>
    %16 = arith.maximumf %14, %15 : vector<8x256xf32>
    %17 = arith.addf %16, %4 : vector<8x256xf32>
    %c0_15 = arith.constant 0 : index
    %c0_16 = arith.constant 0 : index
    %c0_17 = arith.constant 0 : index
    %18 = vector.load %arg8[%c0_15, %c0_16, %c0_17] : memref<2x8x256xf32, #tpu.memory_space<vmem>>, vector<1x8x256xf32>
    %19 = vector.shape_cast %18 : vector<1x8x256xf32> to vector<8x256xf32>
    %20 = vector.shape_cast %17 : vector<8x256xf32> to vector<1x8x256xf32>
    tpu.vector_store %arg8[%c0_15, %c0_16, %c0_17], %20 {strides = array<i32>} : memref<2x8x256xf32, #tpu.memory_space<vmem>>, vector<1x8x256xf32>,
    %c1 = arith.constant 1 : index
    %c0_18 = arith.constant 0 : index
    %c0_19 = arith.constant 0 : index
    %21 = vector.load %arg2[%c1, %c0_18, %c0_19] : memref<2x16x256xf32, #tpu.memory_space<vmem>>, vector<1x16x256xf32>
    %22 = vector.shape_cast %21 : vector<1x16x256xf32> to vector<16x256xf32>
    %cst_20 = arith.constant dense<0.000000e+00> : vector<8x256xf32>
    %23 = tpu.matmul %0, %22, %cst_20 {dimension_numbers = #tpu.dot_dimension_numbers<[1], [0], [0], [1], [0, 0, 1, 1], [], []>} : vector<8x16xf32>, vector<16x256xf32>, vector<8x256xf32> -> vector<8x256xf32>
    %24 = vector.broadcast %2 : vector<8x1xf32> to vector<8x256xf32>
    %25 = arith.addf %23, %24 : vector<8x256xf32>
    %cst_21 = arith.constant 0.000000e+00 : f32
    %26 = vector.broadcast %cst_21 : f32 to vector<8x256xf32>
    %27 = arith.maximumf %25, %26 : vector<8x256xf32>
    %cst_22 = arith.constant dense<0.000000e+00> : vector<8x256xf32>
    %28 = tpu.matmul %1, %27, %cst_22 {dimension_numbers = #tpu.dot_dimension_numbers<[1], [0], [0], [1], [0, 0, 1, 1], [], []>} : vector<8x8xf32>, vector<8x256xf32>, vector<8x256xf32> -> vector<8x256xf32>
    %29 = vector.broadcast %3 : vector<8x1xf32> to vector<8x256xf32>
    %30 = arith.addf %28, %29 : vector<8x256xf32>
    %cst_23 = arith.constant 0.000000e+00 : f32
    %31 = vector.broadcast %cst_23 : f32 to vector<8x256xf32>
    %32 = arith.maximumf %30, %31 : vector<8x256xf32>
    %33 = arith.addf %32, %4 : vector<8x256xf32>
    %c1_24 = arith.constant 1 : index
    %c0_25 = arith.constant 0 : index
    %c0_26 = arith.constant 0 : index
    %34 = vector.load %arg8[%c1_24, %c0_25, %c0_26] : memref<2x8x256xf32, #tpu.memory_space<vmem>>, vector<1x8x256xf32>
    %35 = vector.shape_cast %34 : vector<1x8x256xf32> to vector<8x256xf32>
    %36 = vector.shape_cast %33 : vector<8x256xf32> to vector<1x8x256xf32>
    tpu.vector_store %arg8[%c1_24, %c0_25, %c0_26], %36 {strides = array<i32>} : memref<2x8x256xf32, #tpu.memory_space<vmem>>, vector<1x8x256xf32>,
    return
  }
  func.func @transform_0(%arg0: i32, %arg1: i32) -> (i32, i32, i32) {
    %c0_i32 = arith.constant 0 : i32
    %c0_i32_0 = arith.constant 0 : i32
    return %arg0, %c0_i32, %arg1 : i32, i32, i32
  }
  func.func @transform_1(%arg0: i32, %arg1: i32) -> (i32, i32) {
    %c0_i32 = arith.constant 0 : i32
    %c0_i32_0 = arith.constant 0 : i32
    %c0_i32_1 = arith.constant 0 : i32
    return %c0_i32, %c0_i32_0 : i32, i32
  }
  func.func @transform_2(%arg0: i32, %arg1: i32) -> (i32, i32) {
    %c0_i32 = arith.constant 0 : i32
    %c0_i32_0 = arith.constant 0 : i32
    %c0_i32_1 = arith.constant 0 : i32
    return %c0_i32, %c0_i32_0 : i32, i32
  }
  func.func @transform_3(%arg0: i32, %arg1: i32) -> (i32, i32) {
    %c0_i32 = arith.constant 0 : i32
    %c0_i32_0 = arith.constant 0 : i32
    %c0_i32_1 = arith.constant 0 : i32
    return %c0_i32, %c0_i32_0 : i32, i32
  }
  func.func @transform_4(%arg0: i32, %arg1: i32) -> (i32, i32) {
    %c0_i32 = arith.constant 0 : i32
    %c0_i32_0 = arith.constant 0 : i32
    %c0_i32_1 = arith.constant 0 : i32
    return %c0_i32, %c0_i32_0 : i32, i32
  }
  func.func @transform_5(%arg0: i32, %arg1: i32) -> (i32, i32) {
    %c0_i32 = arith.constant 0 : i32
    %c0_i32_0 = arith.constant 0 : i32
    return %c0_i32, %arg1 : i32, i32
  }
  func.func @transform_6(%arg0: i32, %arg1: i32) -> (i32, i32, i32) {
    %c0_i32 = arith.constant 0 : i32
    %c0_i32_0 = arith.constant 0 : i32
    return %arg0, %c0_i32, %arg1 : i32, i32, i32
  }
}

</mosaic_0001>

<bundles_post_ra>
// kernel: tpu_custom_call.1
= control target key start
LH: loop header
LB: loop body
LE: loop exit
PB: predicated region body
PF: predicated region fallthrough
CT: control target
= control target key end

     0   :  { %11 = vsyncpa [#allocation3], 0  ;;  %s549_s0 = inlined_call_operand.hbm [shape: f32[2,16,256], index: 0, kind: input, shape index: {}]   ;;  %s550_s1 = inlined_call_operand.vmem [shape: f32[8,16], index: 1, kind: input, shape index: {}]   ;;  %s551_s2 = inlined_call_operand.vmem [shape: f32[8,1], index: 2, kind: input, shape index: {}]   ;;  %s552_s3 = inlined_call_operand.vmem [shape: f32[8,8], index: 3, kind: input, shape index: {}]   ;;  %s553_s4 = inlined_call_operand.vmem [shape: f32[8,1], index: 4, kind: input, shape index: {}]   ;;  %s554_s5 = inlined_call_operand.vmem [shape: f32[8,256], index: 5, kind: input, shape index: {}]   ;;  %s555_s6 = inlined_call_operand.hbm [shape: f32[2,8,256], index: 6, kind: output, shape index: {}]  }
   0x1   :  { %12 = vsyncpa [#allocation4], 0  ;;  %s456_s21 = smov [#allocation2]   ;;  %s408_s25 = scalar_lea.hbm %s549_s0, 1024 }
   0x2   :  { %s18_s22 = sshll.u32 %s456_s21, 4  ;;  %p409_p0 = scmp.ne.s32.totalorder %s549_s0, %s408_s25  ;;  %s19_s22 = int_to_ptr.vmem [resolvable:$true] %s18_s22 }
   0x3   :  { %p412_p1 = scmp.lt.u32.totalorder %s408_s25, %s549_s0 }
   0x5   :  { %p414_p2 = pnand %p412_p1, %p409_p0 }
   0x7   :  { %417 = shalt.err (!%p414_p2)
}
   0x8   :  { %s418_s30 = scalar_lea.vmem %s19_s22, 1024  ;;  %p423_p4 = scmp.lt.s32.totalorder %s19_s22, %s19_s22 }
   0x9   :  { %p419_p3 = scmp.ne.s32.totalorder %s19_s22, %s418_s30  ;;  %p424_p5 = scmp.lt.s32.totalorder %s418_s30, %s418_s30 }
   0xb   :  { %p425_p6 = por %p424_p5, %p423_p4 }
   0xd   :  { %p426_p7 = pnand %p425_p6, %p419_p3 }
   0xf   :  { %429 = shalt.err (!%p426_p7)
}
  0x10   :  { %s457_s7 = smov 256   ;;  %s458_s8 = smov 16  }
  0x11   :  { %24 = dma.hbm_to_vmem [thread:$0]  %s549_s0, 1024, %s19_s22, [#allocation3], %s457_s7, %s457_s7, %s458_s8  }
  0x12   :  { %452 = dma.done.wait [#allocation3], 1024  }
  0x13   :  { %453 = vsyncadd [#allocation3], 4294966272  ;;  %v459_v0 = vmov 0.0   ;;  %v460_v1 = vmov 0   ;;  %v45_v2 = vld [vmem:[#allocation2 + $0x8] sm:$0xff]  ;;  %v47_v3 = vld [vmem:[#allocation2 + $0x18] sm:$0xff] }
  0x14   :  { %121 = vmatprep.mubr.f32.mxu0 %v459_v0  ;;  %407 = vset.pattern.permute.xlu0 %v460_v1  ;;  %v44_v4 = vld [vmem:[#allocation2] sm:$0xff]  ;;  %v393_v5 = vpack.c.bf16 %v47_v3, %v45_v2  ;;  %v46_v6 = vld [vmem:[#allocation2 + $0x10] sm:$0xff]  ;;  %vm53_vm0 = vcmask 130048   ;;  %v218_v15 = vld [vmem:[#allocation2 + $0x28] sm:$0xff]  ;;  %vm135_vm1 = vcmask 64512  }
  0x15   :  { %203 = vmatprep.mubr.f32.mxu1 %v459_v0  ;;  %v40_v7 = vld [vmem:[%s551_s2] sm:$0xff]  ;;  %v395_v8 = vpack.c.bf16 %v46_v6, %v44_v4  ;;  %v220_v16 = vld [vmem:[#allocation2 + $0x38] sm:$0xff]  ;;  %v219_v19 = vld [vmem:[#allocation2 + $0x30] sm:$0xff] }
  0x16   :  { %50 = vperm.xlu0 %407, %v40_v7   ;;  %394 = vmatprep.subr.bf16.mxu0 %v393_v5  ;;  %v41_v9 = vld [vmem:[%s553_s4] sm:$0xff]  ;;  %v397_v21 = vpack.c.bf16 %v220_v16, %v218_v15  ;;  %v43_v32 = vld [vmem:[%s554_s5 + $0x8] sm:$0xff] }
  0x17   :  { %396 = vmatpush1.bf16.msra.mxu0 %v395_v8  ;;  %v38_v10 = vld [vmem:[%s550_s1] sm:$0xff] }
  0x18   :  { %v217_v18 = vld [vmem:[#allocation2 + $0x20] sm:$0xff] }
  0x19   :  { %v39_v23 = vld [vmem:[%s552_s3] sm:$0xff]  ;;  %v399_v24 = vpack.c.bf16 %v219_v19, %v217_v18 }
  0x1a   :  { %132 = vperm.xlu0 %407, %v41_v9   ;;  %389 = vmatmul.mubr.msk.f32.vlgmr.msra.gmra.mrb[0].mxu0 %vm53_vm0, %v38_v10  ;;  %v42_v29 = vld [vmem:[%s554_s5] sm:$0xff]  ;;  %s461_s5 = smov [#allocation5]  }
  0x1b   :  { %358 = vmatprep.mubr.f32.mxu0 %v459_v0  ;;  %s377_s18 = sshll.u32 %s461_s5, 4  ;;  %s378_s18 = int_to_ptr.vmem [resolvable:$true] %s377_s18 }
  0x1c   :  { %s430_s19 = scalar_lea.vmem %s378_s18, 512  ;;  %p435_p9 = scmp.lt.s32.totalorder %s378_s18, %s378_s18 }
  0x1d   :  { %p431_p8 = scmp.ne.s32.totalorder %s378_s18, %s430_s19  ;;  %p436_p10 = scmp.lt.s32.totalorder %s430_s19, %s430_s19 }
  0x1f   :  { %p437_p11 = por %p436_p10, %p435_p9 }
  0x21   :  { %p438_p12 = pnand %p437_p11, %p431_p8 }
  0x95   :  { %v51_v11 = vpop.permute.xlu0 %50 }
  0x99   :  { %v133_v25 = vpop.permute.xlu0 %132 }
  0xed   :  { %v123_v12 = vpop.f32.mrb[0].mxu0 }
  0xee   :  { %v124_v13 = vadd.f32 %v123_v12, %v51_v11  ;;  %v125_v14 = vpop.f32.mrb[1].mxu0 }
  0xef   :  { %v126_v17 = vadd.f32 %v125_v14, %v51_v11 }
  0xf0   :  { %v128_v22 = vmax.f32 %v124_v13, 0.0 }
  0xf1   :  { %v129_v20 = vmax.f32 %v126_v17, 0.0 }
  0xf3   :  { %139 = vmatprep.subr.mxu1 %v129_v20 }
  0xf4   :  { %140 = vmatpush1.msra.mxu1 %v128_v22 }
  0xf5   :  { %390 = vmatmul.mubr.msk.f32.vlgmr.msra.gmra.mrb[0].mxu1 %vm135_vm1, %v39_v23  ;;  %398 = vmatprep.subr.bf16.mxu1 %v397_v21 }
  0xf6   :  { %400 = vmatpush1.bf16.msra.mxu1 %v399_v24  ;;  %285 = vmatprep.mubr.f32.mxu1 %v459_v0 }
  0xf9   :  { %391 = vmatmul.mubr.msk.f32.vlgmr.msra.gmra.mrb[2].mxu1 %vm53_vm0, %v38_v10 }
 0x1c8   :  { %v205_v26 = vpop.f32.mrb[0].mxu1 }
 0x1c9   :  { %v206_v27 = vadd.f32 %v205_v26, %v133_v25  ;;  %v207_v28 = vpop.f32.mrb[1].mxu1 }
 0x1ca   :  { %v208_v30 = vadd.f32 %v207_v28, %v133_v25 }
 0x1cb   :  { %v210_v31 = vmax.f32 %v206_v27, 0.0 }
 0x1cc   :  { %v211_v33 = vmax.f32 %v208_v30, 0.0  ;;  %v287_v34 = vpop.f32.mrb[2].mxu1 }
 0x1cd   :  { %v212_v35 = vadd.f32 %v210_v31, %v42_v29  ;;  %v288_v36 = vadd.f32 %v287_v34, %v51_v11  ;;  %v289_v37 = vpop.f32.mrb[3].mxu1 }
 0x1ce   :  { %v213_v38 = vadd.f32 %v211_v33, %v43_v32  ;;  %v290_v39 = vadd.f32 %v289_v37, %v51_v11 }
 0x1cf   :  { %214 = vst [vmem:[#allocation5] sm:$0xff] %v212_v35  ;;  %v292_v41 = vmax.f32 %v288_v36, 0.0 }
 0x1d0   :  { %215 = vst [vmem:[#allocation5 + $0x8] sm:$0xff] %v213_v38  ;;  %v293_v40 = vmax.f32 %v290_v39, 0.0 }
 0x1d2   :  { %294 = vmatprep.subr.mxu0 %v293_v40 }
 0x1d3   :  { %295 = vmatpush1.msra.mxu0 %v292_v41 }
 0x1d4   :  { %392 = vmatmul.mubr.msk.f32.vlgmr.msra.gmra.mrb[2].mxu0 %vm135_vm1, %v39_v23 }
 0x2a7   :  { %v360_v42 = vpop.f32.mrb[2].mxu0 }
 0x2a8   :  { %v361_v43 = vadd.f32 %v360_v42, %v133_v25  ;;  %v362_v44 = vpop.f32.mrb[3].mxu0 }
 0x2a9   :  { %v363_v45 = vadd.f32 %v362_v44, %v133_v25 }
 0x2aa   :  { %v365_v46 = vmax.f32 %v361_v43, 0.0 }
 0x2ab   :  { %v366_v47 = vmax.f32 %v363_v45, 0.0 }
 0x2ac   :  { %v367_v48 = vadd.f32 %v365_v46, %v42_v29 }
 0x2ad   :  { %v368_v49 = vadd.f32 %v366_v47, %v43_v32 }
 0x2ae   :  { %370 = vst [vmem:[#allocation5 + $0x10] sm:$0xff] %v367_v48 }
 0x2af   :  { %371 = vst [vmem:[#allocation5 + $0x18] sm:$0xff] %v368_v49 }
 0x2b0   :  { %441 = shalt.err (!%p438_p12)
}
 0x2b1   :  { %s442_s22 = scalar_lea.hbm %s555_s6, 512 }
 0x2b2   :  { %p443_p13 = scmp.ne.s32.totalorder %s555_s6, %s442_s22  ;;  %p446_p0 = scmp.lt.u32.totalorder %s442_s22, %s555_s6 }
 0x2b4   :  { %p448_p1 = pnand %p446_p0, %p443_p13 }
 0x2b6   :  { %451 = shalt.err (!%p448_p1)
}
 0x2b7   :  { %383 = dma.vmem_to_hbm [thread:$0]  %s378_s18, 512, %s555_s6, [#allocation4], %s457_s7, %s457_s7, %s458_s8  }
 0x2b8   :  { %454 = dma.done.wait [#allocation4], 512  }
 0x2b9   :  { %455 = vsyncadd [#allocation4], 4294966784 }
 0x2ba   :  { %387 = vsyncpa [#allocation3], 1 }
 0x2bb   :  { %388 = vsyncpa [#allocation4], 1 }

</bundles_post_ra>
